<compile_context>
chip_gen: v6e
topology: v6e:2x2x1
jax: 0.10.0
libtpu: 0.0.40
codegen_flags: <defaults>
</compile_context>

<pallas_src>
import functools

import jax
import jax.numpy as jnp
from jax.experimental import pallas as pl
from jax.experimental.pallas import tpu as pltpu

LANES = 128
SUBLANES = 8

_ARBITRARY = getattr(pltpu, "ARBITRARY", "arbitrary")
_PARALLEL = getattr(pltpu, "PARALLEL", "parallel")
_CORE_PARALLEL = getattr(pltpu, "CORE_PARALLEL", None)


def _cdiv(a, b):
    return -(-a // b)


def _round_up(a, b):
    return _cdiv(a, b) * b


def _tpu_info():
    try:
        return pltpu.get_tpu_info()
    except Exception:
        return None


def _num_tensorcores():
    """Best-effort TensorCores-per-chip (v7x: 2, v5e/v6e: 1). Defaults to 1."""
    info = _tpu_info()
    if info is not None:
        for attr in ("num_cores", "core_count", "num_tensorcores",
                     "tensorcore_count", "cores_per_chip"):
            try:
                v = int(getattr(info, attr))
                if v > 0:
                    return v
            except Exception:
                pass
    try:
        kind = jax.devices()[0].device_kind.lower()
        if "v7" in kind:
            return 2
    except Exception:
        pass
    return 1


def _vmem_capacity_bytes():
    info = _tpu_info()
    if info is not None:
        try:
            v = int(getattr(info, "vmem_capacity_bytes"))
            if v > 0:
                return v
        except Exception:
            pass
    return 64 << 20  # conservative default = v7x per-core VMEM


def _partial_sums_kernel(p_ref, g_ref, m_ref, out_ref, *,
                         max_depth, valid_rows, acc_rows):
    """Accumulates (sum(mask), sum(mask*diff^2), sum(mask*|diff|)) per core.

    The output block (1, 3, acc_rows, 128) is resident across the row-tile
    axis and used directly as the accumulator (no scratch, no epilogue copy).
    Row-validity masking only runs on the slow path (tail / duplicated tiles).
    """
    j = pl.program_id(1)

    @pl.when(j == 0)
    def _():
        out_ref[...] = jnp.zeros_like(out_ref)

    t = p_ref.shape[0]
    # Logical row-tile index handled by this step (core-major ordering); must
    # stay consistent with data_map's clamp in the wrapper.
    blk = pl.program_id(0) * pl.num_programs(1) + j
    row0 = blk * t

    p = p_ref[...].astype(jnp.float32)
    g = g_ref[...].astype(jnp.float32)
    m = m_ref[...].astype(jnp.float32)

    if max_depth is not None:
        md = jnp.float32(max_depth)
        p = jnp.clip(p, 0.0, md)
        g = jnp.clip(g, 0.0, md)

    def _fold(x):
        # (t, 128) -> (acc_rows, 128) via pure vreg adds on the VPU.
        return x.reshape(t // acc_rows, acc_rows, LANES).sum(axis=0)

    def _accumulate(mask_f, diff):
        ad = jnp.abs(diff)
        mad = mask_f * ad                      # mask * |diff|
        msq = mad * ad                         # mask * diff^2 (exact: m*|d|*|d|)
        out_ref[0, 0, :, :] += _fold(mask_f)
        out_ref[0, 1, :, :] += _fold(msq)
        out_ref[0, 2, :, :] += _fold(mad)

    interior = row0 + t <= valid_rows

    @pl.when(interior)
    def _():
        # Fast path: every row of this tile is valid data -> no masking work.
        _accumulate(m, p - g)

    @pl.when(jnp.logical_not(interior))
    def _():
        # Slow path (ragged tail tile or clamped duplicate tile): zero OOB
        # rows with NaN-safe selects before any multiply.
        row_ids = jax.lax.broadcasted_iota(jnp.int32, (t, LANES), 0) + row0
        valid = row_ids < valid_rows
        mm = jnp.where(valid, m, 0.0)
        dd = jnp.where(valid, p - g, 0.0)
        _accumulate(mm, dd)


def depth_estimation_loss(predicted_depth, ground_truth_depth, mask,
                          alpha=0.85, beta=0.15, max_depth=None,
                          tile_rows=8192, num_cores=None,
                          use_core_parallel=True):
    """Pallas implementation of DepthEstimationLoss.forward.

    NOTE: like the PyTorch reference, an all-zero mask yields NaN/Inf
    (division by sum(mask)); semantics are preserved intentionally.
    bf16 predictions/targets and bool/int8 masks are streamed without any
    wrapper-side upcast (the kernel casts per tile).
    """
    assert predicted_depth.shape == ground_truth_depth.shape == mask.shape

    p = jnp.asarray(predicted_depth).reshape(-1)
    g = jnp.asarray(ground_truth_depth).reshape(-1)
    m = jnp.asarray(mask).reshape(-1)
    if m.dtype == jnp.bool_:
        m = m.astype(jnp.int8)  # same 1 B/elem HBM traffic; avoids i1 ref lowering

    n = p.shape[0]
    rem = n % LANES
    if rem:
        # TODO(synk): tail pad (<128 elems) still forces a copy of the three
        # inputs; only taken when the element count is not a multiple of 128.
        pad = LANES - rem
        p = jnp.pad(p, (0, pad))
        g = jnp.pad(g, (0, pad))
        m = jnp.pad(m, (0, pad))
    rows = p.shape[0] // LANES

    p2 = p.reshape(rows, LANES)
    g2 = g.reshape(rows, LANES)
    m2 = m.reshape(rows, LANES)

    # Sublane multiple = native packed tile of the narrowest dtype in use
    # (f32 -> 8, bf16 -> 16, int8 -> 32) so packed layouts need no relayout.
    sub_mult = SUBLANES
    for x in (p2, g2, m2):
        packing = max(1, 4 // jnp.dtype(x.dtype).itemsize)
        sub_mult = max(sub_mult, SUBLANES * packing)

    detected_cores = _num_tensorcores()
    nc = detected_cores if num_cores is None else int(num_cores)
    nc = max(1, min(nc, _cdiv(rows, SUBLANES)))

    # Tile height: close to tile_rows, split evenly across cores so clamped
    # duplicate tiles are rare; capped so a block never greatly exceeds the data.
    rows_per_core = _cdiv(rows, nc)
    tiles_per_core = max(1, _cdiv(rows_per_core, max(sub_mult, int(tile_rows))))
    t = _round_up(_cdiv(rows_per_core, tiles_per_core), sub_mult)
    t = min(t, _round_up(rows, SUBLANES))
    last_real_tile = _cdiv(rows, t) - 1        # last in-bounds row-tile index

    # Wider accumulator where the tile allows it (shorter vadd dep chains).
    acc_rows = 32 if t % 32 == 0 else (16 if t % 16 == 0 else SUBLANES)

    def data_map(i, j):
        # Clamp so the DMA never targets a fully out-of-range tile; the
        # duplicated tile is zeroed by the in-kernel row-validity slow path.
        return (jnp.minimum(i * tiles_per_core + j, last_real_tile), 0)

    in_specs = [pl.BlockSpec((t, LANES), data_map) for _ in range(3)]
    out_spec = pl.BlockSpec((1, 3, acc_rows, LANES), lambda i, j: (i, 0, 0, 0))

    # 3 inputs x 2 pipeline buffers per step + headroom, capped at ~75% of this
    # generation's physical VMEM (128 MiB on v5e/v6e, 64 MiB on v7x).
    bytes_per_step = sum(2 * t * LANES * jnp.dtype(x.dtype).itemsize
                         for x in (p2, g2, m2))
    vmem_cap = int(0.75 * _vmem_capacity_bytes())
    vmem_limit = int(min(max(32 << 20, bytes_per_step + (4 << 20)), vmem_cap))

    if (use_core_parallel and nc > 1 and nc == detected_cores
            and _CORE_PARALLEL is not None):
        sem0 = _CORE_PARALLEL      # guarantee the split across TensorCores (v7x)
    elif nc > 1:
        sem0 = _PARALLEL
    else:
        sem0 = _ARBITRARY

    kernel = functools.partial(_partial_sums_kernel, max_depth=max_depth,
                               valid_rows=rows, acc_rows=acc_rows)

    parts = pl.pallas_call(
        kernel,
        out_shape=jax.ShapeDtypeStruct((nc, 3, acc_rows, LANES), jnp.float32),
        grid_spec=pltpu.PrefetchScalarGridSpec(
            num_scalar_prefetch=0,
            grid=(nc, tiles_per_core),
            in_specs=in_specs,
            out_specs=out_spec,
        ),
        compiler_params=pltpu.CompilerParams(
            dimension_semantics=(sem0, _ARBITRARY),
            vmem_limit_bytes=vmem_limit),
    )(p2, g2, m2)

    # Tiny final combine over (nc, 3, acc_rows, 128) partial sums.
    sums = jnp.sum(parts, axis=(0, 2, 3))      # [sum(m), sum(m*d^2), sum(m*|d|)]
    denom = sums[0]
    l2 = sums[1] / denom   # all-zero mask -> NaN/Inf, same as PyTorch reference
    l1 = sums[2]
    return jnp.float32(alpha) * l2 + jnp.float32(beta) * l1


def _reference_loss(p, g, m, alpha=0.85, beta=0.15, max_depth=None):
    p = p.astype(jnp.float32)
    g = g.astype(jnp.float32)
    m = m.astype(jnp.float32)
    if max_depth is not None:
        p = jnp.clip(p, 0, max_depth)
        g = jnp.clip(g, 0, max_depth)
    denom = jnp.sum(m)
    l2 = jnp.sum(m * (p - g) ** 2) / denom
    l1 = jnp.sum(m * jnp.abs(p - g))
    return alpha * l2 + beta * l1


if __name__ == "__main__":
    key = jax.random.PRNGKey(0)

    def check(idx, shape, data_dtype=jnp.float32, mask_dtype=jnp.float32,
              max_depth=None, **kw):
        k1, k2, k3 = jax.random.split(jax.random.fold_in(key, idx), 3)
        pred = (jax.random.uniform(k1, shape, jnp.float32) * 10.0).astype(data_dtype)
        gt = (jax.random.uniform(k2, shape, jnp.float32) * 10.0).astype(data_dtype)
        msk = (jax.random.uniform(k3, shape, jnp.float32) > 0.3).astype(mask_dtype)
        out = jax.block_until_ready(
            depth_estimation_loss(pred, gt, msk, alpha=0.85, beta=0.15,
                                  max_depth=max_depth, **kw))
        ref = _reference_loss(pred, gt, msk, alpha=0.85, beta=0.15,
                              max_depth=max_depth)
        assert jnp.allclose(out, ref, rtol=1e-5, atol=1e-5), (shape, out, ref)

    # Main small NCHW depth-map case.
    check(0, (2, 1, 16, 16))
    # max_depth clamp path.
    check(1, (2, 1, 16, 16), max_depth=5.0)
    # Low-bandwidth mask (bool) input.
    check(2, (2, 1, 16, 16), mask_dtype=jnp.bool_)
    # bf16 predictions / targets (narrow-dtype streaming path).
    check(3, (2, 1, 16, 16), data_dtype=jnp.bfloat16)
    # Multi-tile / two-partition split with ragged + duplicated tiles.
    check(4, (2, 1, 32, 80), tile_rows=16, num_cores=2)
    # Element count not a multiple of 128 (tail-pad path).
    check(5, (2, 1, 10, 10), tile_rows=16)
    # Several interior fast-path tiles accumulated over the reduction axis.
    check(6, (2, 1, 64, 128), tile_rows=32)

    print("KERNEL_OK")
</pallas_src>

<mosaic_0001>
module attributes {stable_mosaic.version = 11 : i64} {
  func.func @_partial_sums_kernel(%arg0: i32, %arg1: i32, %arg2: memref<8x128xf32, #tpu.memory_space<vmem>>, %arg3: memref<8x128xf32, #tpu.memory_space<vmem>>, %arg4: memref<8x128xf32, #tpu.memory_space<vmem>>, %arg5: memref<1x3x8x128xf32, #tpu.memory_space<vmem>>) attributes {dimension_semantics = [#tpu.dimension_semantics<arbitrary>, #tpu.dimension_semantics<arbitrary>], iteration_bounds = array<i64: 1, 1>, scalar_prefetch = 0 : i64, scratch_operands = 0 : i64, tpu.core_type = #tpu.core_type<tc>, window_params = [{transform_indices = @transform_0, window_bounds = array<i64: 8, 128>}, {transform_indices = @transform_1, window_bounds = array<i64: 8, 128>}, {transform_indices = @transform_2, window_bounds = array<i64: 8, 128>}, {transform_indices = @transform_3, window_bounds = array<i64: 1, 3, 8, 128>}]} {
    %c0_i32 = arith.constant 0 : i32
    %0 = arith.cmpi eq, %arg1, %c0_i32 : i32
    %1 = arith.extui %0 : i1 to i32
    %c0_i32_0 = arith.constant 0 : i32
    %2 = arith.cmpi ne, %1, %c0_i32_0 : i32
    scf.if %2 {
      %cst = arith.constant 0.000000e+00 : f32
      %16 = vector.broadcast %cst : f32 to vector<1x3x8x128xf32>
      %c0_9 = arith.constant 0 : index
      %c0_10 = arith.constant 0 : index
      %c0_11 = arith.constant 0 : index
      %c0_12 = arith.constant 0 : index
      %17 = vector.load %arg5[%c0_9, %c0_10, %c0_11, %c0_12] : memref<1x3x8x128xf32, #tpu.memory_space<vmem>>, vector<1x3x8x128xf32>
      tpu.vector_store %arg5[%c0_9, %c0_10, %c0_11, %c0_12], %16 {strides = array<i32>} : memref<1x3x8x128xf32, #tpu.memory_space<vmem>>, vector<1x3x8x128xf32>,
    } else {
    }
    %c1_i32 = arith.constant 1 : i32
    %3 = arith.muli %arg0, %c1_i32 : i32
    %4 = arith.addi %3, %arg1 : i32
    %c8_i32 = arith.constant 8 : i32
    %5 = arith.muli %4, %c8_i32 : i32
    %c0 = arith.constant 0 : index
    %c0_1 = arith.constant 0 : index
    %6 = vector.load %arg2[%c0, %c0_1] : memref<8x128xf32, #tpu.memory_space<vmem>>, vector<8x128xf32>
    %c0_2 = arith.constant 0 : index
    %c0_3 = arith.constant 0 : index
    %7 = vector.load %arg3[%c0_2, %c0_3] : memref<8x128xf32, #tpu.memory_space<vmem>>, vector<8x128xf32>
    %c0_4 = arith.constant 0 : index
    %c0_5 = arith.constant 0 : index
    %8 = vector.load %arg4[%c0_4, %c0_5] : memref<8x128xf32, #tpu.memory_space<vmem>>, vector<8x128xf32>
    %c8_i32_6 = arith.constant 8 : i32
    %9 = arith.addi %5, %c8_i32_6 : i32
    %c4_i32 = arith.constant 4 : i32
    %10 = arith.cmpi sle, %9, %c4_i32 : i32
    %11 = arith.extui %10 : i1 to i32
    %c0_i32_7 = arith.constant 0 : i32
    %12 = arith.cmpi ne, %11, %c0_i32_7 : i32
    scf.if %12 {
      %16 = arith.subf %6, %7 : vector<8x128xf32>
      %17 = math.absf %16 : vector<8x128xf32>
      %18 = arith.mulf %8, %17 : vector<8x128xf32>
      %19 = arith.mulf %18, %17 : vector<8x128xf32>
      %c0_9 = arith.constant 0 : index
      %c0_10 = arith.constant 0 : index
      %c0_11 = arith.constant 0 : index
      %c0_12 = arith.constant 0 : index
      %20 = vector.load %arg5[%c0_9, %c0_10, %c0_11, %c0_12] : memref<1x3x8x128xf32, #tpu.memory_space<vmem>>, vector<1x1x8x128xf32>
      %21 = vector.shape_cast %20 : vector<1x1x8x128xf32> to vector<8x128xf32>
      %22 = vector.shape_cast %8 : vector<8x128xf32> to vector<1x8x128xf32>
      %cst = arith.constant dense<0.000000e+00> : vector<8x128xf32>
      %23 = vector.multi_reduction <add>, %22, %cst [0] : vector<1x8x128xf32> to vector<8x128xf32>
      %24 = arith.addf %21, %23 : vector<8x128xf32>
      %c0_13 = arith.constant 0 : index
      %c0_14 = arith.constant 0 : index
      %c0_15 = arith.constant 0 : index
      %c0_16 = arith.constant 0 : index
      %25 = vector.load %arg5[%c0_13, %c0_14, %c0_15, %c0_16] : memref<1x3x8x128xf32, #tpu.memory_space<vmem>>, vector<1x1x8x128xf32>
      %26 = vector.shape_cast %25 : vector<1x1x8x128xf32> to vector<8x128xf32>
      %27 = vector.shape_cast %24 : vector<8x128xf32> to vector<1x1x8x128xf32>
      tpu.vector_store %arg5[%c0_13, %c0_14, %c0_15, %c0_16], %27 {strides = array<i32>} : memref<1x3x8x128xf32, #tpu.memory_space<vmem>>, vector<1x1x8x128xf32>,
      %c0_17 = arith.constant 0 : index
      %c1 = arith.constant 1 : index
      %c0_18 = arith.constant 0 : index
      %c0_19 = arith.constant 0 : index
      %28 = vector.load %arg5[%c0_17, %c1, %c0_18, %c0_19] : memref<1x3x8x128xf32, #tpu.memory_space<vmem>>, vector<1x1x8x128xf32>
      %29 = vector.shape_cast %28 : vector<1x1x8x128xf32> to vector<8x128xf32>
      %30 = vector.shape_cast %19 : vector<8x128xf32> to vector<1x8x128xf32>
      %cst_20 = arith.constant dense<0.000000e+00> : vector<8x128xf32>
      %31 = vector.multi_reduction <add>, %30, %cst_20 [0] : vector<1x8x128xf32> to vector<8x128xf32>
      %32 = arith.addf %29, %31 : vector<8x128xf32>
      %c0_21 = arith.constant 0 : index
      %c1_22 = arith.constant 1 : index
      %c0_23 = arith.constant 0 : index
      %c0_24 = arith.constant 0 : index
      %33 = vector.load %arg5[%c0_21, %c1_22, %c0_23, %c0_24] : memref<1x3x8x128xf32, #tpu.memory_space<vmem>>, vector<1x1x8x128xf32>
      %34 = vector.shape_cast %33 : vector<1x1x8x128xf32> to vector<8x128xf32>
      %35 = vector.shape_cast %32 : vector<8x128xf32> to vector<1x1x8x128xf32>
      tpu.vector_store %arg5[%c0_21, %c1_22, %c0_23, %c0_24], %35 {strides = array<i32>} : memref<1x3x8x128xf32, #tpu.memory_space<vmem>>, vector<1x1x8x128xf32>,
      %c0_25 = arith.constant 0 : index
      %c2 = arith.constant 2 : index
      %c0_26 = arith.constant 0 : index
      %c0_27 = arith.constant 0 : index
      %36 = vector.load %arg5[%c0_25, %c2, %c0_26, %c0_27] : memref<1x3x8x128xf32, #tpu.memory_space<vmem>>, vector<1x1x8x128xf32>
      %37 = vector.shape_cast %36 : vector<1x1x8x128xf32> to vector<8x128xf32>
      %38 = vector.shape_cast %18 : vector<8x128xf32> to vector<1x8x128xf32>
      %cst_28 = arith.constant dense<0.000000e+00> : vector<8x128xf32>
      %39 = vector.multi_reduction <add>, %38, %cst_28 [0] : vector<1x8x128xf32> to vector<8x128xf32>
      %40 = arith.addf %37, %39 : vector<8x128xf32>
      %c0_29 = arith.constant 0 : index
      %c2_30 = arith.constant 2 : index
      %c0_31 = arith.constant 0 : index
      %c0_32 = arith.constant 0 : index
      %41 = vector.load %arg5[%c0_29, %c2_30, %c0_31, %c0_32] : memref<1x3x8x128xf32, #tpu.memory_space<vmem>>, vector<1x1x8x128xf32>
      %42 = vector.shape_cast %41 : vector<1x1x8x128xf32> to vector<8x128xf32>
      %43 = vector.shape_cast %40 : vector<8x128xf32> to vector<1x1x8x128xf32>
      tpu.vector_store %arg5[%c0_29, %c2_30, %c0_31, %c0_32], %43 {strides = array<i32>} : memref<1x3x8x128xf32, #tpu.memory_space<vmem>>, vector<1x1x8x128xf32>,
    } else {
    }
    %true = arith.constant true
    %13 = arith.xori %10, %true : i1
    %14 = arith.extui %13 : i1 to i32
    %c0_i32_8 = arith.constant 0 : i32
    %15 = arith.cmpi ne, %14, %c0_i32_8 : i32
    scf.if %15 {
      %16 = tpu.iota {dimensions = array<i32: 0>} : vector<8x128xi32>
      %17 = vector.broadcast %5 : i32 to vector<8x128xi32>
      %18 = arith.addi %16, %17 : vector<8x128xi32>
      %c4_i32_9 = arith.constant 4 : i32
      %19 = vector.broadcast %c4_i32_9 : i32 to vector<8x128xi32>
      %20 = arith.cmpi slt, %18, %19 : vector<8x128xi32>
      %cst = arith.constant 0.000000e+00 : f32
      %21 = vector.broadcast %cst : f32 to vector<8x128xf32>
      %22 = arith.select %20, %8, %21 : vector<8x128xi1>, vector<8x128xf32>
      %23 = arith.subf %6, %7 : vector<8x128xf32>
      %cst_10 = arith.constant 0.000000e+00 : f32
      %24 = vector.broadcast %cst_10 : f32 to vector<8x128xf32>
      %25 = arith.select %20, %23, %24 : vector<8x128xi1>, vector<8x128xf32>
      %26 = math.absf %25 : vector<8x128xf32>
      %27 = arith.mulf %22, %26 : vector<8x128xf32>
      %28 = arith.mulf %27, %26 : vector<8x128xf32>
      %c0_11 = arith.constant 0 : index
      %c0_12 = arith.constant 0 : index
      %c0_13 = arith.constant 0 : index
      %c0_14 = arith.constant 0 : index
      %29 = vector.load %arg5[%c0_11, %c0_12, %c0_13, %c0_14] : memref<1x3x8x128xf32, #tpu.memory_space<vmem>>, vector<1x1x8x128xf32>
      %30 = vector.shape_cast %29 : vector<1x1x8x128xf32> to vector<8x128xf32>
      %31 = vector.shape_cast %22 : vector<8x128xf32> to vector<1x8x128xf32>
      %cst_15 = arith.constant dense<0.000000e+00> : vector<8x128xf32>
      %32 = vector.multi_reduction <add>, %31, %cst_15 [0] : vector<1x8x128xf32> to vector<8x128xf32>
      %33 = arith.addf %30, %32 : vector<8x128xf32>
      %c0_16 = arith.constant 0 : index
      %c0_17 = arith.constant 0 : index
      %c0_18 = arith.constant 0 : index
      %c0_19 = arith.constant 0 : index
      %34 = vector.load %arg5[%c0_16, %c0_17, %c0_18, %c0_19] : memref<1x3x8x128xf32, #tpu.memory_space<vmem>>, vector<1x1x8x128xf32>
      %35 = vector.shape_cast %34 : vector<1x1x8x128xf32> to vector<8x128xf32>
      %36 = vector.shape_cast %33 : vector<8x128xf32> to vector<1x1x8x128xf32>
      tpu.vector_store %arg5[%c0_16, %c0_17, %c0_18, %c0_19], %36 {strides = array<i32>} : memref<1x3x8x128xf32, #tpu.memory_space<vmem>>, vector<1x1x8x128xf32>,
      %c0_20 = arith.constant 0 : index
      %c1 = arith.constant 1 : index
      %c0_21 = arith.constant 0 : index
      %c0_22 = arith.constant 0 : index
      %37 = vector.load %arg5[%c0_20, %c1, %c0_21, %c0_22] : memref<1x3x8x128xf32, #tpu.memory_space<vmem>>, vector<1x1x8x128xf32>
      %38 = vector.shape_cast %37 : vector<1x1x8x128xf32> to vector<8x128xf32>
      %39 = vector.shape_cast %28 : vector<8x128xf32> to vector<1x8x128xf32>
      %cst_23 = arith.constant dense<0.000000e+00> : vector<8x128xf32>
      %40 = vector.multi_reduction <add>, %39, %cst_23 [0] : vector<1x8x128xf32> to vector<8x128xf32>
      %41 = arith.addf %38, %40 : vector<8x128xf32>
      %c0_24 = arith.constant 0 : index
      %c1_25 = arith.constant 1 : index
      %c0_26 = arith.constant 0 : index
      %c0_27 = arith.constant 0 : index
      %42 = vector.load %arg5[%c0_24, %c1_25, %c0_26, %c0_27] : memref<1x3x8x128xf32, #tpu.memory_space<vmem>>, vector<1x1x8x128xf32>
      %43 = vector.shape_cast %42 : vector<1x1x8x128xf32> to vector<8x128xf32>
      %44 = vector.shape_cast %41 : vector<8x128xf32> to vector<1x1x8x128xf32>
      tpu.vector_store %arg5[%c0_24, %c1_25, %c0_26, %c0_27], %44 {strides = array<i32>} : memref<1x3x8x128xf32, #tpu.memory_space<vmem>>, vector<1x1x8x128xf32>,
      %c0_28 = arith.constant 0 : index
      %c2 = arith.constant 2 : index
      %c0_29 = arith.constant 0 : index
      %c0_30 = arith.constant 0 : index
      %45 = vector.load %arg5[%c0_28, %c2, %c0_29, %c0_30] : memref<1x3x8x128xf32, #tpu.memory_space<vmem>>, vector<1x1x8x128xf32>
      %46 = vector.shape_cast %45 : vector<1x1x8x128xf32> to vector<8x128xf32>
      %47 = vector.shape_cast %27 : vector<8x128xf32> to vector<1x8x128xf32>
      %cst_31 = arith.constant dense<0.000000e+00> : vector<8x128xf32>
      %48 = vector.multi_reduction <add>, %47, %cst_31 [0] : vector<1x8x128xf32> to vector<8x128xf32>
      %49 = arith.addf %46, %48 : vector<8x128xf32>
      %c0_32 = arith.constant 0 : index
      %c2_33 = arith.constant 2 : index
      %c0_34 = arith.constant 0 : index
      %c0_35 = arith.constant 0 : index
      %50 = vector.load %arg5[%c0_32, %c2_33, %c0_34, %c0_35] : memref<1x3x8x128xf32, #tpu.memory_space<vmem>>, vector<1x1x8x128xf32>
      %51 = vector.shape_cast %50 : vector<1x1x8x128xf32> to vector<8x128xf32>
      %52 = vector.shape_cast %49 : vector<8x128xf32> to vector<1x1x8x128xf32>
      tpu.vector_store %arg5[%c0_32, %c2_33, %c0_34, %c0_35], %52 {strides = array<i32>} : memref<1x3x8x128xf32, #tpu.memory_space<vmem>>, vector<1x1x8x128xf32>,
    } else {
    }
    return
  }
  func.func @transform_0(%arg0: i32, %arg1: i32) -> (i32, i32) {
    %c1_i32 = arith.constant 1 : i32
    %0 = arith.muli %arg0, %c1_i32 : i32
    %1 = arith.addi %0, %arg1 : i32
    %c0_i32 = arith.constant 0 : i32
    %2 = arith.minsi %1, %c0_i32 : i32
    %c0_i32_0 = arith.constant 0 : i32
    %c0_i32_1 = arith.constant 0 : i32
    return %2, %c0_i32_0 : i32, i32
  }
  func.func @transform_1(%arg0: i32, %arg1: i32) -> (i32, i32) {
    %c1_i32 = arith.constant 1 : i32
    %0 = arith.muli %arg0, %c1_i32 : i32
    %1 = arith.addi %0, %arg1 : i32
    %c0_i32 = arith.constant 0 : i32
    %2 = arith.minsi %1, %c0_i32 : i32
    %c0_i32_0 = arith.constant 0 : i32
    %c0_i32_1 = arith.constant 0 : i32
    return %2, %c0_i32_0 : i32, i32
  }
  func.func @transform_2(%arg0: i32, %arg1: i32) -> (i32, i32) {
    %c1_i32 = arith.constant 1 : i32
    %0 = arith.muli %arg0, %c1_i32 : i32
    %1 = arith.addi %0, %arg1 : i32
    %c0_i32 = arith.constant 0 : i32
    %2 = arith.minsi %1, %c0_i32 : i32
    %c0_i32_0 = arith.constant 0 : i32
    %c0_i32_1 = arith.constant 0 : i32
    return %2, %c0_i32_0 : i32, i32
  }
  func.func @transform_3(%arg0: i32, %arg1: i32) -> (i32, i32, i32, i32) {
    %c0_i32 = arith.constant 0 : i32
    %c0_i32_0 = arith.constant 0 : i32
    %c0_i32_1 = arith.constant 0 : i32
    %c0_i32_2 = arith.constant 0 : i32
    return %arg0, %c0_i32, %c0_i32_0, %c0_i32_1 : i32, i32, i32, i32
  }
}

</mosaic_0001>

<bundles_post_ra>
// kernel: tpu_custom_call.1
= control target key start
LH: loop header
LB: loop body
LE: loop exit
PB: predicated region body
PF: predicated region fallthrough
CT: control target
= control target key end

     0   :  { %8 = vsyncpa [#allocation3], 0  ;;  %s336_s0 = inlined_call_operand.hbm [shape: f32[4,128], index: 0, kind: input, shape index: {}]   ;;  %s337_s1 = inlined_call_operand.hbm [shape: f32[4,128], index: 1, kind: input, shape index: {}]   ;;  %s338_s2 = inlined_call_operand.hbm [shape: f32[4,128], index: 2, kind: input, shape index: {}]   ;;  %s339_s3 = inlined_call_operand.hbm [shape: f32[1,3,8,128], index: 3, kind: output, shape index: {}]  }
   0x1   :  { %9 = vsyncpa [#allocation6], 0 }
   0x2   :  { %10 = vsyncpa [#allocation4], 0 }
   0x3   :  { %21 = vsyncadd [#allocation3], 64  ;;  %s287_s12 = smov [#allocation2]  }
   0x4   :  { %s26_s13 = sshll.u32 %s287_s12, 4  ;;  %s27_s13 = int_to_ptr.vmem [resolvable:$true] %s26_s13 }
   0x5   :  { %s209_s14 = scalar_lea.vmem %s27_s13, 64  ;;  %s213_s15 = scalar_lea.vmem %s27_s13, 128 }
   0x6   :  { %p210_p0 = scmp.ne.s32.totalorder %s27_s13, %s209_s14  ;;  %p214_p1 = scmp.lt.s32.totalorder %s27_s13, %s27_s13 }
   0x7   :  { %p215_p2 = scmp.lt.s32.totalorder %s213_s15, %s209_s14 }
   0x9   :  { %p216_p3 = por %p215_p2, %p214_p1 }
   0xb   :  { %p217_p4 = pnand %p216_p3, %p210_p0 }
   0xd   :  { %220 = shalt.err (!%p217_p4)
}
   0xe   :  { %s288_s16 = smov 64   ;;  %s289_s17 = smov 4  }
   0xf   :  { %32 = dma.hbm_to_vmem [thread:$0]  %s336_s0, 64, %s27_s13, [#allocation3], %s288_s16, %s288_s16, %s289_s17  }
  0x10   :  { %43 = vsyncadd [#allocation6], 64  ;;  %s290_s20 = smov [#allocation5]  }
  0x11   :  { %s48_s21 = sshll.u32 %s290_s20, 4  ;;  %s49_s21 = int_to_ptr.vmem [resolvable:$true] %s48_s21 }
  0x12   :  { %s229_s22 = scalar_lea.vmem %s49_s21, 64  ;;  %s233_s23 = scalar_lea.vmem %s49_s21, 128 }
  0x13   :  { %p230_p5 = scmp.ne.s32.totalorder %s49_s21, %s229_s22  ;;  %p234_p6 = scmp.lt.s32.totalorder %s49_s21, %s49_s21 }
  0x14   :  { %p235_p7 = scmp.lt.s32.totalorder %s233_s23, %s229_s22 }
  0x16   :  { %p236_p8 = por %p235_p7, %p234_p6 }
  0x18   :  { %p237_p9 = pnand %p236_p8, %p230_p5 }
  0x1a   :  { %240 = shalt.err (!%p237_p9)
}
  0x1b   :  { %54 = dma.hbm_to_vmem [thread:$0]  %s337_s1, 64, %s49_s21, [#allocation6], %s288_s16, %s288_s16, %s289_s17  }
  0x1c   :  { %65 = vsyncadd [#allocation6], 64  ;;  %s291_s0 = smov [#allocation7]  }
  0x1d   :  { %s70_s26 = sshll.u32 %s291_s0, 4  ;;  %s71_s26 = int_to_ptr.vmem [resolvable:$true] %s70_s26 }
  0x1e   :  { %s249_s27 = scalar_lea.vmem %s71_s26, 64  ;;  %s253_s28 = scalar_lea.vmem %s71_s26, 128 }
  0x1f   :  { %p250_p10 = scmp.ne.s32.totalorder %s71_s26, %s249_s27  ;;  %p254_p11 = scmp.lt.s32.totalorder %s71_s26, %s71_s26 }
  0x20   :  { %p255_p12 = scmp.lt.s32.totalorder %s253_s28, %s249_s27 }
  0x22   :  { %p256_p13 = por %p255_p12, %p254_p11 }
  0x24   :  { %p257_p0 = pnand %p256_p13, %p250_p10 }
  0x26   :  { %260 = shalt.err (!%p257_p0)
}
  0x27   :  { %76 = dma.hbm_to_vmem [thread:$0]  %s338_s2, 64, %s71_s26, [#allocation6], %s288_s16, %s288_s16, %s289_s17  }
  0x28   :  { %281 = dma.done.wait [#allocation3], 128  }
  0x29   :  { %282 = vsyncadd [#allocation3], 4294967168 }
  0x2a   :  { %283 = dma.done.wait [#allocation6], 256  }
  0x2b   :  { %284 = vsyncadd [#allocation6], 4294967040  ;;  %v143_v0 = vlaneseq  ;;  %v113_v2 = vld [vmem:[#allocation2] sm:$0xff]  ;;  %v114_v3 = vld [vmem:[#allocation5] sm:$0xff]  ;;  %s292_s1 = smov [#allocation8]  }
  0x2c   :  { %v115_v4 = vld [vmem:[#allocation7] sm:$0xff]  ;;  %v149_v6 = vsub.f32 %v113_v2, %v114_v3  ;;  %s173_s4 = sshll.u32 %s292_s1, 4  ;;  %s174_s4 = int_to_ptr.vmem [resolvable:$true] %s173_s4 }
  0x2d   :  { %v144_v1 = vshrl.u32 %v143_v0, 7  ;;  %s261_s2 = scalar_lea.vmem %s174_s4, 384  ;;  %p266_p2 = scmp.lt.s32.totalorder %s174_s4, %s174_s4 }
  0x2e   :  { %p262_p1 = scmp.ne.s32.totalorder %s174_s4, %s261_s2  ;;  %p267_p3 = scmp.lt.s32.totalorder %s261_s2, %s261_s2 }
  0x2f   :  { %vm147_vm0 = vcmp.lt.s32.totalorder %v144_v1, 4 }
  0x30   :  { %v148_v5 = vsel %vm147_vm0, %v115_v4, 0.0  ;;  %v150_v7 = vsel %vm147_vm0, %v149_v6, 0.0  ;;  %p268_p4 = por %p267_p3, %p266_p2 }
  0x31   :  { %v151_v8 = vand.u32 2147483647, %v150_v7  ;;  %157 = vst [vmem:[#allocation8] sm:$0xff] %v148_v5 }
  0x32   :  { %p269_p5 = pnand %p268_p4, %p262_p1 }
  0x33   :  { %v152_v9 = vmul.f32 %v151_v8, %v148_v5 }
  0x35   :  { %v153_v10 = vmul.f32 %v152_v9, %v151_v8  ;;  %167 = vst [vmem:[#allocation8 + $0x10] sm:$0xff] %v152_v9 }
  0x37   :  { %162 = vst [vmem:[#allocation8 + $0x8] sm:$0xff] %v153_v10 }
  0x38   :  { %272 = shalt.err (!%p269_p5)
}
  0x39   :  { %s293_s5 = smov 128   ;;  %s294_s6 = smov 8  }
  0x3a   :  { %179 = dma.vmem_to_hbm [thread:$0]  %s174_s4, 384, %s339_s3, [#allocation4], %s293_s5, %s293_s5, %s294_s6  }
  0x3b   :  { %285 = dma.done.wait [#allocation4], 384  }
  0x3c   :  { %286 = vsyncadd [#allocation4], 4294966912 }
  0x3d   :  { %183 = vsyncpa [#allocation3], 1 }
  0x3e   :  { %184 = vsyncpa [#allocation6], 1 }
  0x3f   :  { %185 = vsyncpa [#allocation4], 1 }

</bundles_post_ra>
